<compile_context>
chip_gen: v6e
topology: v6e:2x2x1
jax: 0.10.0
libtpu: 0.0.40
codegen_flags: <defaults>
</compile_context>

<pallas_src>
import functools

import jax
import jax.numpy as jnp
from jax import lax
from jax.experimental import pallas as pl
from jax.experimental.pallas import tpu as pltpu

_LANES = 128
_MIN_BLOCK_ROWS = 512      # 256 KiB f32 per input block — overhead amortized
_MAX_BLOCK_ROWS = 8192     # 4 MiB  f32 per input block
_VMEM_LIMIT_BYTES = 48 * 1024 * 1024   # 2 inputs x 2 bufs x 4 MiB + f32 temps


def _choose_block_rows(rows: int, cap: int) -> int:
    """Pick a block row count: big blocks, ~8 tiles for large inputs."""
    cap = min(int(cap), _MAX_BLOCK_ROWS)
    cap = max(8, (cap // 8) * 8)
    lo = min(_MIN_BLOCK_ROWS, cap)
    if rows <= lo:
        # Small input: one block covering the full row extent (legal BlockSpec:
        # block dim equals the array dim), no edge masking needed.
        return rows
    target = -(-rows // 8)                 # cdiv(rows, 8)  -> ~8 tiles
    target = ((target + 7) // 8) * 8       # multiple of 8
    return max(lo, min(target, cap))


def _logloss_kernel(pred_ref, tgt_ref, out_ref, *, eps, rows, block_rows,
                    mask_rows, binary_targets):
    p = pred_ref[...].astype(jnp.float32)
    t = tgt_ref[...].astype(jnp.float32)

    # clamp(pred, eps, 1 - eps)  (with eps=1e-15 the upper clamp is a no-op in
    # f32 — identical to the f32 PyTorch behavior).
    p = jnp.clip(p, eps, 1.0 - eps)

    if binary_targets:
        # Hard 0/1 labels: one log per element (EUP pressure halved on v7x).
        loss = -jnp.log(jnp.where(t > 0.5, p, 1.0 - p))
    else:
        # -t*log(p) - (1-t)*log(1-p) == -(log(1-p) + t*(log(p) - log(1-p)))
        lp = jnp.log(p)
        lq = jnp.log(1.0 - p)
        loss = -(lq + t * (lp - lq))

    if mask_rows:
        # Only row-granular masking is ever needed: the body is 128-aligned,
        # so invalid data can only be whole out-of-bounds rows in the ragged
        # Pallas edge block.  Reduce over lanes first, then mask a
        # (block_rows, 1) column — negligible work on every block.
        i = pl.program_id(0)
        valid = rows - i * block_rows          # >= block_rows except last tile
        row_id = lax.broadcasted_iota(jnp.int32, (block_rows, 1), 0)
        row_sums = jnp.sum(loss, axis=1, keepdims=True)
        s = jnp.sum(jnp.where(row_id < valid, row_sums, 0.0))
    else:
        s = jnp.sum(loss)

    # Per-tile partial sum, broadcast into a small lane-dense (1, 1, 128)
    # output block; wrapper reads [:, 0, 0].  Keeps the grid axis fully
    # parallel (no carried accumulator).
    out_ref[...] = jnp.full(out_ref.shape, s, dtype=out_ref.dtype)


@functools.partial(jax.jit, static_argnums=(2, 3, 4))
def _log_loss_impl(pred, target, eps, binary_targets, block_rows_cap):
    assert pred.shape == target.shape
    n = pred.size

    flat_p = pred.reshape(-1)
    flat_t = target.reshape(-1)

    rows = n // _LANES
    tail = n - rows * _LANES
    total = jnp.float32(0.0)

    if rows > 0:
        body = rows * _LANES
        # No full-tensor pad: aligned case is a pure metadata reshape; ragged
        # case slices only the 128-aligned prefix (tail handled below).
        p2 = (flat_p if tail == 0 else flat_p[:body]).reshape(rows, _LANES)
        t2 = (flat_t if tail == 0 else flat_t[:body]).reshape(rows, _LANES)

        block_rows = _choose_block_rows(rows, block_rows_cap)
        num_tiles = pl.cdiv(rows, block_rows)
        mask_rows = (rows % block_rows) != 0   # static

        kernel = functools.partial(
            _logloss_kernel,
            eps=float(eps),
            rows=int(rows),
            block_rows=int(block_rows),
            mask_rows=bool(mask_rows),
            binary_targets=bool(binary_targets),
        )

        partials = pl.pallas_call(
            kernel,
            out_shape=jax.ShapeDtypeStruct((num_tiles, 1, _LANES), jnp.float32),
            grid_spec=pltpu.PrefetchScalarGridSpec(
                num_scalar_prefetch=0,
                grid=(num_tiles,),
                in_specs=[
                    pl.BlockSpec((block_rows, _LANES), lambda i: (i, 0)),
                    pl.BlockSpec((block_rows, _LANES), lambda i: (i, 0)),
                ],
                out_specs=pl.BlockSpec((1, 1, _LANES), lambda i: (i, 0, 0)),
            ),
            compiler_params=pltpu.CompilerParams(
                dimension_semantics=("parallel",),
                vmem_limit_bytes=_VMEM_LIMIT_BYTES,
            ),
        )(p2, t2)

        total = total + jnp.sum(partials[:, 0, 0])

    if tail:
        # <128 trailing elements: trivial wrapper-side contribution (avoids
        # padding / copying the full tensors).
        tp = flat_p[rows * _LANES:].astype(jnp.float32)
        tt = flat_t[rows * _LANES:].astype(jnp.float32)
        tp = jnp.clip(tp, eps, 1.0 - eps)
        lp = jnp.log(tp)
        lq = jnp.log(1.0 - tp)
        total = total + jnp.sum(-(lq + tt * (lp - lq)))

    return total / n


def log_loss(pred, target, eps=1e-15, binary_targets=False,
             block_rows_cap=_MAX_BLOCK_ROWS):
    """Pallas TPU implementation of LogLoss.forward (returns a scalar f32).

    Set binary_targets=True only if targets are guaranteed hard 0/1 labels
    (enables a single-log fast path; numerically identical for hard labels).
    """
    return _log_loss_impl(pred, target, float(eps), bool(binary_targets),
                          int(block_rows_cap))


def _reference(pred, target, eps=1e-15):
    p = jnp.clip(pred.astype(jnp.float32), eps, 1.0 - eps)
    t = target.astype(jnp.float32)
    loss = -t * jnp.log(p) - (1.0 - t) * jnp.log(1.0 - p)
    return jnp.mean(loss)


if __name__ == "__main__":
    key = jax.random.PRNGKey(0)
    k1, k2, k3, k4, k5, k6 = jax.random.split(key, 6)

    # 1) Small aligned input (sigmoid outputs vs. binary labels), single tile.
    shape = (2, 4, 16, 16)
    pred = jax.nn.sigmoid(jax.random.normal(k1, shape, dtype=jnp.float32))
    target = (jax.random.uniform(k2, shape) > 0.5).astype(jnp.float32)

    out = log_loss(pred, target)
    jax.block_until_ready(out)
    ref = _reference(pred, target)
    assert jnp.allclose(out, ref, rtol=1e-5, atol=1e-6), (out, ref)

    # Binary-label fast path (single log) must match too.
    out_b = log_loss(pred, target, binary_targets=True)
    jax.block_until_ready(out_b)
    assert jnp.allclose(out_b, ref, rtol=1e-5, atol=1e-6), (out_b, ref)

    # 2) Ragged size (not a multiple of 128) with soft targets, and a small
    #    block cap to exercise the multi-tile + ragged-edge-row mask path
    #    plus the wrapper-side tail.
    shape2 = (20, 131)   # 2620 elements -> 20 full rows + 60-element tail
    pred2 = jax.nn.sigmoid(jax.random.normal(k3, shape2, dtype=jnp.float32))
    target2 = jax.random.uniform(k4, shape2, dtype=jnp.float32)  # soft labels

    out2 = log_loss(pred2, target2, block_rows_cap=8)
    jax.block_until_ready(out2)
    ref2 = _reference(pred2, target2)
    assert jnp.allclose(out2, ref2, rtol=1e-5, atol=1e-6), (out2, ref2)

    # 3) Moderate aligned input with default sizing: multiple tiles and a
    #    ragged last grid block (1040 rows, block 512 -> 3 tiles).
    shape3 = (5, 208, 128)
    pred3 = jax.nn.sigmoid(jax.random.normal(k5, shape3, dtype=jnp.float32))
    target3 = (jax.random.uniform(k6, shape3) > 0.5).astype(jnp.float32)

    out3 = log_loss(pred3, target3)
    jax.block_until_ready(out3)
    ref3 = _reference(pred3, target3)
    assert jnp.allclose(out3, ref3, rtol=1e-5, atol=1e-6), (out3, ref3)

    print("KERNEL_OK")
</pallas_src>

<mosaic_0001>
module attributes {stable_mosaic.version = 11 : i64} {
  func.func @_logloss_kernel(%arg0: i32, %arg1: memref<16x128xf32, #tpu.memory_space<vmem>>, %arg2: memref<16x128xf32, #tpu.memory_space<vmem>>, %arg3: memref<1x1x128xf32, #tpu.memory_space<vmem>>) attributes {dimension_semantics = [#tpu.dimension_semantics<parallel>], iteration_bounds = array<i64: 1>, scalar_prefetch = 0 : i64, scratch_operands = 0 : i64, tpu.core_type = #tpu.core_type<tc>, window_params = [{transform_indices = @transform_0, window_bounds = array<i64: 16, 128>}, {transform_indices = @transform_1, window_bounds = array<i64: 16, 128>}, {transform_indices = @transform_2, window_bounds = array<i64: 1, 1, 128>}]} {
    %c0 = arith.constant 0 : index
    %c0_0 = arith.constant 0 : index
    %0 = vector.load %arg1[%c0, %c0_0] : memref<16x128xf32, #tpu.memory_space<vmem>>, vector<16x128xf32>
    %c0_1 = arith.constant 0 : index
    %c0_2 = arith.constant 0 : index
    %1 = vector.load %arg2[%c0_1, %c0_2] : memref<16x128xf32, #tpu.memory_space<vmem>>, vector<16x128xf32>
    %cst = arith.constant 1.000000e-15 : f32
    %cst_3 = arith.constant 1.000000e+00 : f32
    %2 = vector.broadcast %cst : f32 to vector<16x128xf32>
    %3 = arith.maximumf %2, %0 : vector<16x128xf32>
    %4 = vector.broadcast %cst_3 : f32 to vector<16x128xf32>
    %5 = arith.minimumf %4, %3 : vector<16x128xf32>
    %6 = math.log %5 : vector<16x128xf32>
    %cst_4 = arith.constant 1.000000e+00 : f32
    %7 = vector.broadcast %cst_4 : f32 to vector<16x128xf32>
    %8 = arith.subf %7, %5 : vector<16x128xf32>
    %9 = math.log %8 : vector<16x128xf32>
    %10 = arith.subf %6, %9 : vector<16x128xf32>
    %11 = arith.mulf %1, %10 : vector<16x128xf32>
    %12 = arith.addf %9, %11 : vector<16x128xf32>
    %cst_5 = arith.constant 0.000000e+00 : f32
    %13 = vector.broadcast %cst_5 : f32 to vector<16x128xf32>
    %14 = arith.subf %13, %12 : vector<16x128xf32>
    %15 = vector.shape_cast %14 : vector<16x128xf32> to vector<1x16x128xf32>
    %cst_6 = arith.constant dense<0.000000e+00> : vector<1xf32>
    %16 = vector.multi_reduction <add>, %15, %cst_6 [1, 2] : vector<1x16x128xf32> to vector<1xf32>
    %17 = vector.shape_cast %16 : vector<1xf32> to vector<1x1x1xf32>
    %18 = vector.extract %17[0, 0, 0] : f32 from vector<1x1x1xf32>
    %19 = vector.broadcast %18 : f32 to vector<1x1x128xf32>
    %c0_7 = arith.constant 0 : index
    %c0_8 = arith.constant 0 : index
    %c0_9 = arith.constant 0 : index
    %20 = vector.load %arg3[%c0_7, %c0_8, %c0_9] : memref<1x1x128xf32, #tpu.memory_space<vmem>>, vector<1x1x128xf32>
    tpu.vector_store %arg3[%c0_7, %c0_8, %c0_9], %19 {strides = array<i32>} : memref<1x1x128xf32, #tpu.memory_space<vmem>>, vector<1x1x128xf32>,
    return
  }
  func.func @transform_0(%arg0: i32) -> (i32, i32) {
    %c0_i32 = arith.constant 0 : i32
    %c0_i32_0 = arith.constant 0 : i32
    return %arg0, %c0_i32 : i32, i32
  }
  func.func @transform_1(%arg0: i32) -> (i32, i32) {
    %c0_i32 = arith.constant 0 : i32
    %c0_i32_0 = arith.constant 0 : i32
    return %arg0, %c0_i32 : i32, i32
  }
  func.func @transform_2(%arg0: i32) -> (i32, i32, i32) {
    %c0_i32 = arith.constant 0 : i32
    %c0_i32_0 = arith.constant 0 : i32
    %c0_i32_1 = arith.constant 0 : i32
    return %arg0, %c0_i32, %c0_i32_0 : i32, i32, i32
  }
}

</mosaic_0001>

<bundles_post_ra>
// kernel: _log_loss_impl.1
= control target key start
LH: loop header
LB: loop body
LE: loop exit
PB: predicated region body
PF: predicated region fallthrough
CT: control target
= control target key end

     0   :  { %s93_s0 = inlined_call_operand.vmem [shape: f32[16,128], index: 0, kind: input, shape index: {}]   ;;  %s94_s1 = inlined_call_operand.vmem [shape: f32[16,128], index: 1, kind: input, shape index: {}]   ;;  %s95_s2 = inlined_call_operand.vmem [shape: f32[1,1,128], index: 2, kind: output, shape index: {}]  }
   0x1   :  { %v11_v0 = vld [vmem:[%s93_s0] sm:$0xff]  ;;  %v12_v1 = vld [vmem:[%s93_s0 + $0x8] sm:$0xff] }
   0x2   :  { %v15_v2 = vmax.f32 %v11_v0, 1e-15  ;;  %v16_v3 = vmax.f32 %v12_v1, 1e-15  ;;  %v13_v15 = vld [vmem:[%s94_s1] sm:$0xff]  ;;  %v14_v17 = vld [vmem:[%s94_s1 + $0x8] sm:$0xff] }
   0x4   :  { %v17_v4 = vmin.f32 %v15_v2, 1.0  ;;  %v18_v5 = vmin.f32 %v16_v3, 1.0 }
   0x6   :  { %55 = vlog2.f32 %v17_v4  ;;  %v23_v6 = vsub.f32 1.0, %v17_v4  ;;  %v24_v7 = vsub.f32 1.0, %v18_v5 }
   0x7   :  { %57 = vlog2.f32 %v18_v5 }
   0x8   :  { %59 = vlog2.f32 %v23_v6 }
   0x9   :  { %61 = vlog2.f32 %v24_v7 }
  0x13   :  { %v56_v8 = vpop.eup %55 }
  0x14   :  { %v58_v9 = vpop.eup %57  ;;  %v20_v10 = vmul.f32 0.6931472, %v56_v8 }
  0x15   :  { %v60_v11 = vpop.eup %59  ;;  %v22_v12 = vmul.f32 0.6931472, %v58_v9 }
  0x16   :  { %v62_v13 = vpop.eup %61  ;;  %v26_v14 = vmul.f32 0.6931472, %v60_v11 }
  0x17   :  { %v28_v16 = vmul.f32 0.6931472, %v62_v13 }
  0x18   :  { %v29_v18 = vsub.f32 %v20_v10, %v26_v14 }
  0x19   :  { %v30_v19 = vsub.f32 %v22_v12, %v28_v16 }
  0x1a   :  { %v31_v20 = vmul.f32 %v29_v18, %v13_v15 }
  0x1b   :  { %v32_v21 = vmul.f32 %v30_v19, %v14_v17 }
  0x1c   :  { %v33_v22 = vadd.f32 %v31_v20, %v26_v14 }
  0x1d   :  { %v34_v23 = vadd.f32 %v32_v21, %v28_v16 }
  0x1e   :  { %v35_v24 = vsub.f32 0.0, %v33_v22 }
  0x1f   :  { %v36_v25 = vsub.f32 0.0, %v34_v23 }
  0x21   :  { %v37_v26 = vadd.f32 %v36_v25, %v35_v24 }
  0x23   :  { %38 = vadd.xlane.f32.xlu0 %v37_v26 }
  0xac   :  { %v39_v27 = vpop.xlane.xlu0 %38 }
  0xad   :  { %v40_v28 = vrot.slane %v39_v27, 4 }
  0xaf   :  { %v41_v29 = vadd.f32 %v40_v28, %v39_v27 }
  0xb1   :  { %v42_v30 = vrot.slane %v41_v29, 2 }
  0xb3   :  { %v43_v31 = vadd.f32 %v42_v30, %v41_v29 }
  0xb5   :  { %v44_v32 = vrot.slane %v43_v31, 1 }
  0xb7   :  { %v45_v33 = vadd.f32 %v44_v32, %v43_v31 }
  0xb9   :  { %53 = vpush %v45_v33 }
  0xea   :  { %s54_s16 = spop %53 }
  0xeb   :  { %v47_v34 = vstv %s54_s16 }
  0xec   :  { %48 = vst [vmem:[%s95_s2] sm:$0x1] %v47_v34 }

</bundles_post_ra>
